<compile_context>
chip_gen: v5e
topology: v5e:2x2
jax: 0.10.0
libtpu: 0.0.40
codegen_flags: <defaults>
</compile_context>

<pallas_src>
import functools
import math

import jax
import jax.numpy as jnp
from jax.experimental import pallas as pl
from jax.experimental.pallas import tpu as pltpu


# ---------------------------------------------------------------------------
# small helpers
# ---------------------------------------------------------------------------

def _row_tile(n):
    """Largest 'nice' row tile: 256/128 if they divide n, else the full extent."""
    for cand in (256, 128):
        if n % cand == 0:
            return cand
    return n


def _padded_bytes(shape, dtype):
    """VMEM footprint of an array after (8, 128) padding of the last two dims."""
    s = list(shape)
    if len(s) >= 1:
        s[-1] = -(-s[-1] // 128) * 128
    if len(s) >= 2:
        s[-2] = -(-s[-2] // 8) * 8
    n = 1
    for d in s:
        n *= int(d)
    return n * jnp.dtype(dtype).itemsize


def _exp_dtype():
    """bf16 exp only on chips with a bf16 EUP (v6e/v7x); f32 elsewhere (e.g. v5e)."""
    try:
        kind = jax.devices()[0].device_kind.lower()
    except Exception:
        return jnp.float32
    if "v6" in kind or "v7" in kind:
        return jnp.bfloat16
    return jnp.float32


# ---------------------------------------------------------------------------
# Stage 1: fused linear projections  y_j = x @ W_j + b_j  (bf16 outputs in HBM)
# ---------------------------------------------------------------------------

def _make_proj_kernel(n_out):
    def kernel(*refs):
        x_ref = refs[0]
        x = x_ref[0].astype(jnp.bfloat16)                                  # (TR, d_in)
        for j in range(n_out):                                             # independent dots
            w_ref = refs[1 + 2 * j]
            b_ref = refs[2 + 2 * j]
            o_ref = refs[1 + 2 * n_out + j]
            y = jnp.dot(x, w_ref[...], preferred_element_type=jnp.float32) + b_ref[...]
            o_ref[...] = y[None].astype(o_ref.dtype)
    return kernel


def _project(x, weight_bias_pairs, *, tile_rows=None):
    """x: (B, R, d_in) f32; weight_bias_pairs: [(W (d_in,d_out) bf16, b (1,d_out) f32)].
    Returns a list of (B, R, d_out) bf16 arrays."""
    B, R, d_in = x.shape
    tr = tile_rows if tile_rows is not None else _row_tile(R)
    assert R % tr == 0
    nr = R // tr
    n_out = len(weight_bias_pairs)

    in_specs = [pl.BlockSpec((1, tr, d_in), lambda b, r: (b, r, 0))]
    args = [x]
    out_shapes, out_specs = [], []
    flops = 0
    bytes_accessed = B * R * d_in * x.dtype.itemsize
    for w, b in weight_bias_pairs:
        d_out = w.shape[1]
        in_specs.append(pl.BlockSpec((d_in, d_out), lambda b_, r_: (0, 0)))   # fetched once
        in_specs.append(pl.BlockSpec((1, d_out), lambda b_, r_: (0, 0)))
        args.extend([w, b])
        out_shapes.append(jax.ShapeDtypeStruct((B, R, d_out), jnp.bfloat16))
        out_specs.append(pl.BlockSpec((1, tr, d_out), lambda b_, r_: (b_, r_, 0)))
        flops += 2 * B * R * d_in * d_out
        bytes_accessed += int(w.size) * 2 + int(b.size) * 4 + B * R * d_out * 2

    outs = pl.pallas_call(
        _make_proj_kernel(n_out),
        out_shape=tuple(out_shapes),
        grid_spec=pltpu.PrefetchScalarGridSpec(
            num_scalar_prefetch=0,
            grid=(B, nr),
            in_specs=in_specs,
            out_specs=tuple(out_specs)),
        compiler_params=pltpu.CompilerParams(
            dimension_semantics=("parallel", "parallel")),
        cost_estimate=pl.CostEstimate(flops=int(flops), transcendentals=0,
                                      bytes_accessed=int(bytes_accessed)),
    )(*args)
    if not isinstance(outs, (tuple, list)):
        outs = (outs,)
    return list(outs)


# ---------------------------------------------------------------------------
# Stage 2: flash-style multi-head attention + fused output projection
# ---------------------------------------------------------------------------

def _flash_kernel(q_ref, k_ref, v_ref, wo_ref, bo_ref, o_ref,
                  m_scr, l_scr, acc_scr, z_scr, *,
                  h, d_k, d_v, tq, tkv, causal_mask, exp_dtype):
    kt = pl.program_id(2)
    n_kv = pl.num_programs(2)
    q_row0 = pl.program_id(1) * tq
    kv_col0 = kt * tkv

    @pl.when(kt == 0)
    def _():
        m_scr[...] = jnp.full_like(m_scr, -jnp.inf)
        l_scr[...] = jnp.zeros_like(l_scr)
        acc_scr[...] = jnp.zeros_like(acc_scr)

    def _compute():
        if causal_mask:
            # Built once per kv block (hoisted out of the head loop).
            row = q_row0 + jax.lax.broadcasted_iota(jnp.int32, (tq, tkv), 0)
            col = kv_col0 + jax.lax.broadcasted_iota(jnp.int32, (tq, tkv), 1)
            keep = col <= row
        for i in range(h):                                        # static unroll, small h
            # Ref-sliced loads: only this head's lanes are fetched from VMEM.
            qi = q_ref[0, :, i * d_k:(i + 1) * d_k]               # (TQ, d_k)  bf16
            ki = k_ref[0, :, i * d_k:(i + 1) * d_k]               # (TKV, d_k) bf16
            vi = v_ref[0, :, i * d_v:(i + 1) * d_v]               # (TKV, d_v) bf16
            # Scores: contract d_k directly -- no explicit K transpose.
            s = jax.lax.dot_general(qi, ki, (((1,), (1,)), ((), ())),
                                    preferred_element_type=jnp.float32)   # (TQ, TKV) f32
            if causal_mask:
                s = jnp.where(keep, s, jnp.float32(-1e30))
            m_prev = m_scr[:, i:i + 1]
            l_prev = l_scr[:, i:i + 1]
            m_new = jnp.maximum(m_prev, jnp.max(s, axis=-1, keepdims=True))
            alpha = jnp.exp(m_prev - m_new)
            # exp in bf16 on chips with a bf16 EUP; row-sum kept in f32.
            p = jnp.exp((s - m_new).astype(exp_dtype))
            l_scr[:, i:i + 1] = alpha * l_prev + jnp.sum(
                p.astype(jnp.float32), axis=-1, keepdims=True)
            pv = jnp.dot(p.astype(jnp.bfloat16), vi,
                         preferred_element_type=jnp.float32)              # (TQ, d_v) f32
            acc_scr[:, i * d_v:(i + 1) * d_v] = (
                alpha * acc_scr[:, i * d_v:(i + 1) * d_v] + pv)
            m_scr[:, i:i + 1] = m_new

    if causal_mask:
        # Skip kv blocks that lie entirely above the diagonal for this q tile.
        pl.when(kv_col0 <= q_row0 + tq - 1)(_compute)
    else:
        _compute()

    @pl.when(kt == n_kv - 1)
    def _():
        # Normalize each head into the bf16 Z slab (no list/concat relayout), then one
        # lane-dense output projection over the stacked heads.
        for i in range(h):
            inv = pl.reciprocal(l_scr[:, i:i + 1], approx=True)
            z_scr[:, i * d_v:(i + 1) * d_v] = (
                acc_scr[:, i * d_v:(i + 1) * d_v] * inv).astype(z_scr.dtype)
        out = jnp.dot(z_scr[...], wo_ref[...],
                      preferred_element_type=jnp.float32) + bo_ref[...]   # (TQ, d_model)
        o_ref[...] = out[None].astype(o_ref.dtype)


def multi_head_attention(x, params, *, y=None, causal_mask=False, tq=None, tkv=None):
    """x: (B, L, d_model) f32.  y (optional): (B, Lkv, d_model) for cross-attention.
    params: dict of stacked per-head weights (see init_params)."""
    B, L, d_model = x.shape
    x_kv = x if y is None else y
    L_kv = x_kv.shape[1]
    wq = params["wq"]
    h, _, d_k = wq.shape
    d_v = params["wv"].shape[-1]
    hdk, hdv = h * d_k, h * d_v

    tq = tq if tq is not None else _row_tile(L)
    tkv = tkv if tkv is not None else _row_tile(L_kv)
    assert L % tq == 0 and L_kv % tkv == 0, "sequence lengths must divide their tiles"
    nq, nkv = L // tq, L_kv // tkv

    # --- trace-time weight repacking (in a real model this is done once at init) ---
    scale = 1.0 / math.sqrt(d_k)
    wq_all = (jnp.transpose(wq, (1, 0, 2)).reshape(d_model, hdk)
              * scale).astype(jnp.bfloat16)                       # (d_model, h*d_k), scaled
    bq_all = (params["bq"].reshape(1, hdk) * scale).astype(jnp.float32)
    wk_all = jnp.transpose(params["wk"], (1, 0, 2)).reshape(d_model, hdk).astype(jnp.bfloat16)
    bk_all = params["bk"].reshape(1, hdk).astype(jnp.float32)
    wv_all = jnp.transpose(params["wv"], (1, 0, 2)).reshape(d_model, hdv).astype(jnp.bfloat16)
    bv_all = params["bv"].reshape(1, hdv).astype(jnp.float32)
    wo_full = params["wo"].reshape(hdv, d_model).astype(jnp.bfloat16)
    bo = params["bo"].reshape(1, d_model).astype(jnp.float32)

    # --- Stage 1: Q/K/V projections, hoisted out of the attention loop (bf16 in HBM) ---
    if y is None:
        q, k, v = _project(x, [(wq_all, bq_all), (wk_all, bk_all), (wv_all, bv_all)],
                           tile_rows=tq)
    else:
        (q,) = _project(x, [(wq_all, bq_all)], tile_rows=tq)
        k, v = _project(x_kv, [(wk_all, bk_all), (wv_all, bv_all)], tile_rows=tkv)

    # --- Stage 2: flash attention + output projection ---
    exp_dtype = _exp_dtype()
    kernel = functools.partial(_flash_kernel, h=h, d_k=d_k, d_v=d_v,
                               tq=tq, tkv=tkv, causal_mask=causal_mask,
                               exp_dtype=exp_dtype)

    grid_spec = pltpu.PrefetchScalarGridSpec(
        num_scalar_prefetch=0,
        grid=(B, nq, nkv),
        in_specs=[
            pl.BlockSpec((1, tq, hdk), lambda b, qi, ki: (b, qi, 0)),    # Q tile
            pl.BlockSpec((1, tkv, hdk), lambda b, qi, ki: (b, ki, 0)),   # K tile
            pl.BlockSpec((1, tkv, hdv), lambda b, qi, ki: (b, ki, 0)),   # V tile
            pl.BlockSpec((hdv, d_model), lambda b, qi, ki: (0, 0)),      # Wo - fetched once
            pl.BlockSpec((1, d_model), lambda b, qi, ki: (0, 0)),        # bo
        ],
        out_specs=pl.BlockSpec((1, tq, d_model), lambda b, qi, ki: (b, qi, 0)),
        scratch_shapes=[
            pltpu.VMEM((tq, h), jnp.float32),      # running max, per head
            pltpu.VMEM((tq, h), jnp.float32),      # running sum, per head
            pltpu.VMEM((tq, hdv), jnp.float32),    # unnormalized PV accumulators
            pltpu.VMEM((tq, hdv), jnp.bfloat16),   # normalized Z slab for the out-proj
        ],
    )

    # Explicit VMEM budget (double-buffered streamed blocks + weights + scratch),
    # clamped to the v7x physical ceiling; v5e's 16 MiB default is too small otherwise.
    vmem_needed = (
        2 * (_padded_bytes((tq, hdk), jnp.bfloat16)
             + _padded_bytes((tkv, hdk), jnp.bfloat16)
             + _padded_bytes((tkv, hdv), jnp.bfloat16)
             + _padded_bytes((tq, d_model), x.dtype)
             + _padded_bytes((hdv, d_model), jnp.bfloat16)
             + _padded_bytes((1, d_model), jnp.float32))
        + 2 * _padded_bytes((tq, h), jnp.float32)
        + _padded_bytes((tq, hdv), jnp.float32)
        + _padded_bytes((tq, hdv), jnp.bfloat16))
    vmem_limit = int(min(max(2 * vmem_needed, 32 * 2 ** 20), 64 * 2 ** 20))

    flops = 2 * B * L * L_kv * (hdk + hdv) + 2 * B * L * hdv * d_model
    transcendentals = B * h * L * L_kv
    bytes_accessed = ((B * L * hdk + B * L_kv * (hdk + hdv)) * 2
                      + hdv * d_model * 2 + d_model * 4
                      + B * L * d_model * x.dtype.itemsize)

    return pl.pallas_call(
        kernel,
        out_shape=jax.ShapeDtypeStruct((B, L, d_model), x.dtype),
        grid_spec=grid_spec,
        compiler_params=pltpu.CompilerParams(
            dimension_semantics=("parallel", "parallel", "arbitrary"),
            vmem_limit_bytes=vmem_limit),
        cost_estimate=pl.CostEstimate(flops=int(flops),
                                      transcendentals=int(transcendentals),
                                      bytes_accessed=int(bytes_accessed)),
    )(q, k, v, wo_full, bo)


# ---------------------------------------------------------------------------
# reference & params
# ---------------------------------------------------------------------------

def _reference(x, params, y=None, causal_mask=False):
    """Plain-JAX reference matching the PyTorch forward pass (f32 throughout)."""
    h, _, d_k = params["wq"].shape
    x_kv = x if y is None else y
    outs = []
    for i in range(h):
        q = x @ params["wq"][i] + params["bq"][i, 0]
        k = x_kv @ params["wk"][i] + params["bk"][i, 0]
        v = x_kv @ params["wv"][i] + params["bv"][i, 0]
        s = jnp.einsum("bld,bmd->blm", q, k) / math.sqrt(d_k)
        if causal_mask:
            lq, lk = s.shape[-2], s.shape[-1]
            m = jnp.tril(jnp.ones((lq, lk), bool))
            s = jnp.where(m, s, -1e30)
        p = jax.nn.softmax(s, axis=-1)
        outs.append(jnp.einsum("blm,bmv->blv", p, v))
    z = jnp.concatenate(outs, axis=-1)                          # (B, L, h*d_v)
    wo_full = params["wo"].reshape(-1, params["wo"].shape[-1])  # (h*d_v, d_model)
    return z @ wo_full + params["bo"][0, 0]


def init_params(key, h, d_model, d_k, d_v):
    ks = jax.random.split(key, 8)
    scale = 0.02
    return {
        "wq": scale * jax.random.normal(ks[0], (h, d_model, d_k), jnp.float32),
        "bq": scale * jax.random.normal(ks[1], (h, 1, d_k), jnp.float32),
        "wk": scale * jax.random.normal(ks[2], (h, d_model, d_k), jnp.float32),
        "bk": scale * jax.random.normal(ks[3], (h, 1, d_k), jnp.float32),
        "wv": scale * jax.random.normal(ks[4], (h, d_model, d_v), jnp.float32),
        "bv": scale * jax.random.normal(ks[5], (h, 1, d_v), jnp.float32),
        # Output linear (h*d_v, d_model), stored as per-head slabs (h, d_v, d_model).
        "wo": scale * jax.random.normal(ks[6], (h, d_v, d_model), jnp.float32),
        "bo": scale * jax.random.normal(ks[7], (1, 1, d_model), jnp.float32),
    }


if __name__ == "__main__":
    # Small shapes consistent with the module: d_model=32, h=4, d_k=d_v=8.
    B, d_model, h, d_k, d_v = 2, 32, 4, 8, 8
    ATOL, RTOL = 3e-3, 2e-2   # bf16 MXU inputs / bf16 exp / approx recip vs. f32 reference

    key = jax.random.PRNGKey(0)
    kx, ky, kp = jax.random.split(key, 3)
    params = init_params(kp, h, d_model, d_k, d_v)

    # 1) Self-attention, no mask, single q/kv block (L=8).
    x1 = jax.random.normal(kx, (B, 8, d_model), jnp.float32)
    out1 = jax.block_until_ready(multi_head_attention(x1, params))
    ref1 = _reference(x1, params)
    assert out1.shape == ref1.shape
    assert jnp.allclose(out1, ref1, atol=ATOL, rtol=RTOL), float(jnp.max(jnp.abs(out1 - ref1)))

    # 2) Causal self-attention with q AND kv tiling (L=32, tq=tkv=8): exercises the
    #    online softmax across kv blocks and the above-diagonal kv-block skip.
    x2 = jax.random.normal(ky, (B, 32, d_model), jnp.float32)
    out2 = jax.block_until_ready(
        multi_head_attention(x2, params, causal_mask=True, tq=8, tkv=8))
    ref2 = _reference(x2, params, causal_mask=True)
    assert jnp.allclose(out2, ref2, atol=ATOL, rtol=RTOL), float(jnp.max(jnp.abs(out2 - ref2)))

    # 3) Cross-attention (K/V from Y, Lkv != L) with kv tiling (2 kv blocks).
    y3 = jax.random.normal(jax.random.fold_in(key, 3), (B, 16, d_model), jnp.float32)
    out3 = jax.block_until_ready(multi_head_attention(x1, params, y=y3, tkv=8))
    ref3 = _reference(x1, params, y=y3)
    assert jnp.allclose(out3, ref3, atol=ATOL, rtol=RTOL), float(jnp.max(jnp.abs(out3 - ref3)))

    # TODO(synk): nn.Dropout with p > 0 (training mode) is not implemented; p=0.0 / eval
    # mode is the identity and is a no-op in this kernel.
    print("KERNEL_OK")
</pallas_src>

<mosaic_0001>
module attributes {stable_mosaic.version = 11 : i64} {
  func.func @kernel(%arg0: i32, %arg1: i32, %arg2: memref<1x8x32xf32, #tpu.memory_space<vmem>>, %arg3: memref<32x32xbf16, #tpu.memory_space<vmem>>, %arg4: memref<1x32xf32, #tpu.memory_space<vmem>>, %arg5: memref<32x32xbf16, #tpu.memory_space<vmem>>, %arg6: memref<1x32xf32, #tpu.memory_space<vmem>>, %arg7: memref<32x32xbf16, #tpu.memory_space<vmem>>, %arg8: memref<1x32xf32, #tpu.memory_space<vmem>>, %arg9: memref<1x8x32xbf16, #tpu.memory_space<vmem>>, %arg10: memref<1x8x32xbf16, #tpu.memory_space<vmem>>, %arg11: memref<1x8x32xbf16, #tpu.memory_space<vmem>>) attributes {dimension_semantics = [#tpu.dimension_semantics<parallel>, #tpu.dimension_semantics<parallel>], iteration_bounds = array<i64: 2, 1>, scalar_prefetch = 0 : i64, scratch_operands = 0 : i64, tpu.core_type = #tpu.core_type<tc>, window_params = [{transform_indices = @transform_0, window_bounds = array<i64: 1, 8, 32>}, {pipeline_mode = #tpu.pipeline_mode<synchronous>, transform_indices = @transform_1, window_bounds = array<i64: 32, 32>}, {pipeline_mode = #tpu.pipeline_mode<synchronous>, transform_indices = @transform_2, window_bounds = array<i64: 1, 32>}, {pipeline_mode = #tpu.pipeline_mode<synchronous>, transform_indices = @transform_3, window_bounds = array<i64: 32, 32>}, {pipeline_mode = #tpu.pipeline_mode<synchronous>, transform_indices = @transform_4, window_bounds = array<i64: 1, 32>}, {pipeline_mode = #tpu.pipeline_mode<synchronous>, transform_indices = @transform_5, window_bounds = array<i64: 32, 32>}, {pipeline_mode = #tpu.pipeline_mode<synchronous>, transform_indices = @transform_6, window_bounds = array<i64: 1, 32>}, {transform_indices = @transform_7, window_bounds = array<i64: 1, 8, 32>}, {transform_indices = @transform_8, window_bounds = array<i64: 1, 8, 32>}, {transform_indices = @transform_9, window_bounds = array<i64: 1, 8, 32>}]} {
    %c0 = arith.constant 0 : index
    %c0_0 = arith.constant 0 : index
    %c0_1 = arith.constant 0 : index
    %0 = vector.load %arg2[%c0, %c0_0, %c0_1] : memref<1x8x32xf32, #tpu.memory_space<vmem>>, vector<1x8x32xf32>
    %1 = vector.shape_cast %0 : vector<1x8x32xf32> to vector<8x32xf32>
    %2 = arith.truncf %1 : vector<8x32xf32> to vector<8x32xbf16>
    %c0_2 = arith.constant 0 : index
    %c0_3 = arith.constant 0 : index
    %3 = vector.load %arg3[%c0_2, %c0_3] : memref<32x32xbf16, #tpu.memory_space<vmem>>, vector<32x32xbf16>
    %cst = arith.constant dense<0.000000e+00> : vector<8x32xf32>
    %4 = tpu.matmul %2, %3, %cst {dimension_numbers = #tpu.dot_dimension_numbers<[1], [0], [0], [1], [0, 0, 1, 1], [], []>} : vector<8x32xbf16>, vector<32x32xbf16>, vector<8x32xf32> -> vector<8x32xf32>
    %c0_4 = arith.constant 0 : index
    %c0_5 = arith.constant 0 : index
    %5 = vector.load %arg4[%c0_4, %c0_5] : memref<1x32xf32, #tpu.memory_space<vmem>>, vector<1x32xf32>
    %6 = vector.broadcast %5 : vector<1x32xf32> to vector<8x32xf32>
    %7 = arith.addf %4, %6 : vector<8x32xf32>
    %8 = vector.shape_cast %7 : vector<8x32xf32> to vector<1x8x32xf32>
    %9 = arith.truncf %8 : vector<1x8x32xf32> to vector<1x8x32xbf16>
    %c0_6 = arith.constant 0 : index
    %c0_7 = arith.constant 0 : index
    %c0_8 = arith.constant 0 : index
    %10 = vector.load %arg9[%c0_6, %c0_7, %c0_8] : memref<1x8x32xbf16, #tpu.memory_space<vmem>>, vector<1x8x32xbf16>
    tpu.vector_store %arg9[%c0_6, %c0_7, %c0_8], %9 {strides = array<i32>} : memref<1x8x32xbf16, #tpu.memory_space<vmem>>, vector<1x8x32xbf16>,
    %c0_9 = arith.constant 0 : index
    %c0_10 = arith.constant 0 : index
    %11 = vector.load %arg5[%c0_9, %c0_10] : memref<32x32xbf16, #tpu.memory_space<vmem>>, vector<32x32xbf16>
    %cst_11 = arith.constant dense<0.000000e+00> : vector<8x32xf32>
    %12 = tpu.matmul %2, %11, %cst_11 {dimension_numbers = #tpu.dot_dimension_numbers<[1], [0], [0], [1], [0, 0, 1, 1], [], []>} : vector<8x32xbf16>, vector<32x32xbf16>, vector<8x32xf32> -> vector<8x32xf32>
    %c0_12 = arith.constant 0 : index
    %c0_13 = arith.constant 0 : index
    %13 = vector.load %arg6[%c0_12, %c0_13] : memref<1x32xf32, #tpu.memory_space<vmem>>, vector<1x32xf32>
    %14 = vector.broadcast %13 : vector<1x32xf32> to vector<8x32xf32>
    %15 = arith.addf %12, %14 : vector<8x32xf32>
    %16 = vector.shape_cast %15 : vector<8x32xf32> to vector<1x8x32xf32>
    %17 = arith.truncf %16 : vector<1x8x32xf32> to vector<1x8x32xbf16>
    %c0_14 = arith.constant 0 : index
    %c0_15 = arith.constant 0 : index
    %c0_16 = arith.constant 0 : index
    %18 = vector.load %arg10[%c0_14, %c0_15, %c0_16] : memref<1x8x32xbf16, #tpu.memory_space<vmem>>, vector<1x8x32xbf16>
    tpu.vector_store %arg10[%c0_14, %c0_15, %c0_16], %17 {strides = array<i32>} : memref<1x8x32xbf16, #tpu.memory_space<vmem>>, vector<1x8x32xbf16>,
    %c0_17 = arith.constant 0 : index
    %c0_18 = arith.constant 0 : index
    %19 = vector.load %arg7[%c0_17, %c0_18] : memref<32x32xbf16, #tpu.memory_space<vmem>>, vector<32x32xbf16>
    %cst_19 = arith.constant dense<0.000000e+00> : vector<8x32xf32>
    %20 = tpu.matmul %2, %19, %cst_19 {dimension_numbers = #tpu.dot_dimension_numbers<[1], [0], [0], [1], [0, 0, 1, 1], [], []>} : vector<8x32xbf16>, vector<32x32xbf16>, vector<8x32xf32> -> vector<8x32xf32>
    %c0_20 = arith.constant 0 : index
    %c0_21 = arith.constant 0 : index
    %21 = vector.load %arg8[%c0_20, %c0_21] : memref<1x32xf32, #tpu.memory_space<vmem>>, vector<1x32xf32>
    %22 = vector.broadcast %21 : vector<1x32xf32> to vector<8x32xf32>
    %23 = arith.addf %20, %22 : vector<8x32xf32>
    %24 = vector.shape_cast %23 : vector<8x32xf32> to vector<1x8x32xf32>
    %25 = arith.truncf %24 : vector<1x8x32xf32> to vector<1x8x32xbf16>
    %c0_22 = arith.constant 0 : index
    %c0_23 = arith.constant 0 : index
    %c0_24 = arith.constant 0 : index
    %26 = vector.load %arg11[%c0_22, %c0_23, %c0_24] : memref<1x8x32xbf16, #tpu.memory_space<vmem>>, vector<1x8x32xbf16>
    tpu.vector_store %arg11[%c0_22, %c0_23, %c0_24], %25 {strides = array<i32>} : memref<1x8x32xbf16, #tpu.memory_space<vmem>>, vector<1x8x32xbf16>,
    return
  }
  func.func @transform_0(%arg0: i32, %arg1: i32) -> (i32, i32, i32) {
    %c0_i32 = arith.constant 0 : i32
    %c0_i32_0 = arith.constant 0 : i32
    return %arg0, %arg1, %c0_i32 : i32, i32, i32
  }
  func.func @transform_1(%arg0: i32, %arg1: i32) -> (i32, i32) {
    %c0_i32 = arith.constant 0 : i32
    %c0_i32_0 = arith.constant 0 : i32
    %c0_i32_1 = arith.constant 0 : i32
    return %c0_i32, %c0_i32_0 : i32, i32
  }
  func.func @transform_2(%arg0: i32, %arg1: i32) -> (i32, i32) {
    %c0_i32 = arith.constant 0 : i32
    %c0_i32_0 = arith.constant 0 : i32
    %c0_i32_1 = arith.constant 0 : i32
    return %c0_i32, %c0_i32_0 : i32, i32
  }
  func.func @transform_3(%arg0: i32, %arg1: i32) -> (i32, i32) {
    %c0_i32 = arith.constant 0 : i32
    %c0_i32_0 = arith.constant 0 : i32
    %c0_i32_1 = arith.constant 0 : i32
    return %c0_i32, %c0_i32_0 : i32, i32
  }
  func.func @transform_4(%arg0: i32, %arg1: i32) -> (i32, i32) {
    %c0_i32 = arith.constant 0 : i32
    %c0_i32_0 = arith.constant 0 : i32
    %c0_i32_1 = arith.constant 0 : i32
    return %c0_i32, %c0_i32_0 : i32, i32
  }
  func.func @transform_5(%arg0: i32, %arg1: i32) -> (i32, i32) {
    %c0_i32 = arith.constant 0 : i32
    %c0_i32_0 = arith.constant 0 : i32
    %c0_i32_1 = arith.constant 0 : i32
    return %c0_i32, %c0_i32_0 : i32, i32
  }
  func.func @transform_6(%arg0: i32, %arg1: i32) -> (i32, i32) {
    %c0_i32 = arith.constant 0 : i32
    %c0_i32_0 = arith.constant 0 : i32
    %c0_i32_1 = arith.constant 0 : i32
    return %c0_i32, %c0_i32_0 : i32, i32
  }
  func.func @transform_7(%arg0: i32, %arg1: i32) -> (i32, i32, i32) {
    %c0_i32 = arith.constant 0 : i32
    %c0_i32_0 = arith.constant 0 : i32
    return %arg0, %arg1, %c0_i32 : i32, i32, i32
  }
  func.func @transform_8(%arg0: i32, %arg1: i32) -> (i32, i32, i32) {
    %c0_i32 = arith.constant 0 : i32
    %c0_i32_0 = arith.constant 0 : i32
    return %arg0, %arg1, %c0_i32 : i32, i32, i32
  }
  func.func @transform_9(%arg0: i32, %arg1: i32) -> (i32, i32, i32) {
    %c0_i32 = arith.constant 0 : i32
    %c0_i32_0 = arith.constant 0 : i32
    return %arg0, %arg1, %c0_i32 : i32, i32, i32
  }
}

</mosaic_0001>

<bundles_post_ra>
// kernel: tpu_custom_call.1
= control target key start
LH: loop header
LB: loop body
LE: loop exit
PB: predicated region body
PF: predicated region fallthrough
CT: control target
= control target key end

     0   :  { %s1526_s0 = inlined_call_operand.hbm [shape: f32[2,8,32], index: 0, kind: input, shape index: {}]   ;;  %s1527_s1 = inlined_call_operand.hbm [shape: bf16[32,32], index: 1, kind: input, shape index: {}]   ;;  %s1528_s2 = inlined_call_operand.vmem [shape: f32[1,32], index: 2, kind: input, shape index: {}]   ;;  %s1529_s3 = inlined_call_operand.hbm [shape: bf16[32,32], index: 3, kind: input, shape index: {}]   ;;  %s1530_s4 = inlined_call_operand.vmem [shape: f32[1,32], index: 4, kind: input, shape index: {}]   ;;  %s1531_s5 = inlined_call_operand.hbm [shape: bf16[32,32], index: 5, kind: input, shape index: {}]   ;;  %s1532_s6 = inlined_call_operand.vmem [shape: f32[1,32], index: 6, kind: input, shape index: {}]   ;;  %s1533_s7 = inlined_call_operand.hbm [shape: bf16[2,8,32], index: 7, kind: output, shape index: {0}]   ;;  %s1534_s8 = inlined_call_operand.hbm [shape: bf16[2,8,32], index: 8, kind: output, shape index: {1}]   ;;  %s1535_s9 = inlined_call_operand.hbm [shape: bf16[2,8,32], index: 9, kind: output, shape index: {2}]  }
   0x1   :  { %1543 = sst [smem:[#allocation22_spill]] %s1526_s0 }
   0x2   :  { %1544 = sst [smem:[#allocation23_spill]] %s1527_s1 }
   0x3   :  { %1545 = sst [smem:[#allocation24_spill]] %s1528_s2 }
   0x4   :  { %1546 = sst [smem:[#allocation25_spill]] %s1529_s3 }
   0x5   :  { %1547 = sst [smem:[#allocation26_spill]] %s1531_s5 }
   0x6   :  { %15 = vsyncpa [#allocation3], 0 }
   0x7   :  { %17 = vsyncpa [#allocation3 + $0x1], 0 }
   0x8   :  { %18 = vsyncpa [#allocation6], 0 }
   0x9   :  { %19 = vsyncpa [#allocation9], 0 }
   0xa   :  { %20 = vsyncpa [#allocation4], 0 }
   0xb   :  { %22 = vsyncpa [#allocation4 + $0x1], 0 }
   0xc   :  { %23 = vsyncpa [#allocation12], 0 }
   0xd   :  { %25 = vsyncpa [#allocation12 + $0x1], 0  ;;  %s1276_s30 = smov 0   ;;  %s1278_s10 = smov 0  }
   0xe   :  { %s1280_s11 = smov 0   ;;  %s1282_s12 = smov 0  }
   0xf   :  { %s1284_s13 = smov 0   ;;  %s1286_s14 = smov 0  }
  0x10 LB: > { %s1307_s15 = sadd.s32 4294967295, %s1219_s14   ;;  %p785_p0 = scmp.ge.s32.totalorder %s1219_s14, 1  ;;  %s1219_s14 = sphi %s1286_s14, %s31_s14   ;;  %s1215_s13 = sphi %s1284_s13, %s1575_s13   ;;  %s1211_s12 = sphi %s1282_s12, %s1574_s12   ;;  %s1207_s11 = sphi %s1280_s11, %s1573_s11   ;;  %s1203_s10 = sphi %s1278_s10, %s1572_s10   ;;  %s1199_s30 = sphi %s1276_s30, %s1571_s30  }
  0x11   : > { %p66_p1 = scmp.eq.s32.totalorder %s1307_s15, 0  ;;  %p286_p2 = scmp.lt.s32.totalorder %s1219_s14, 3 }
  0x12   : > { %s1548_s1 = sld [smem:[#allocation23_spill]]  ;;  %s1221_s20 = smov [#allocation5]  }
  0x13   : > { %p1315_p3 = pnand %p785_p0, %p286_p2  ;;  %s299_s21 = sshll.u32 %s1221_s20, 4  ;;  %s300_s21 = int_to_ptr.vmem [resolvable:$true] %s299_s21 }
  0x14   : > { %p789_p6 = scmp.ge.s32.totalorder %s1219_s14, 2  ;;  %s1551_s3 = sld [smem:[#allocation25_spill]] }
  0x15   : > { %p861_p4 = pneg %p1315_p3  ;;  %s1222_s26 = smov 64  }
  0x16   : > { %s1223_s27 = smov 4   ;;  %s1224_s28 = smov [#allocation7]  }
  0x17   : > { %p1323_p5 = pnand %p861_p4, %p66_p1  ;;  %s316_s29 = sshll.u32 %s1224_s28, 4  ;;  %s317_s29 = int_to_ptr.vmem [resolvable:$true] %s316_s29 }
  0x18   : > { %s297_s18 = sshll.u32 %s1548_s1, 4  ;;  %s1552_s5 = sld [smem:[#allocation26_spill]]  ;;  %s298_s18 = int_to_ptr.hbm [resolvable:$true] %s297_s18 }
  0x19   : > { %864 = dma.hbm_to_vmem [thread:$0]  (!%p1323_p5), %s298_s18, 256, %s300_s21, [#allocation6], %s1222_s26, %s1222_s26, %s1223_s27  }
  0x1a   : > { %s314_s25 = sshll.u32 %s1551_s3, 4  ;;  %s1225_s23 = smov [#allocation8]   ;;  %s315_s25 = int_to_ptr.hbm [resolvable:$true] %s314_s25 }
  0x1b   : > { %867 = dma.hbm_to_vmem [thread:$0]  (!%p1323_p5), %s315_s25, 256, %s317_s29, [#allocation6], %s1222_s26, %s1222_s26, %s1223_s27  }
  0x1c   : > { %s333_s24 = sshll.u32 %s1225_s23, 4  ;;  %s1536_s18 = sadd.s32 4294967294, %s1219_s14   ;;  %s334_s24 = int_to_ptr.vmem [resolvable:$true] %s333_s24 }
  0x1d   : > { %s43_s21 = sadd.s32 1, %s1215_s13  ;;  %s52_s28 = sadd.s32 1, %s1207_s11 }
  0x1e   : > { %s331_s20 = sshll.u32 %s1552_s5, 4  ;;  %p45_p7 = scmp.ge.s32.totalorder %s43_s21, 2  ;;  %s332_s20 = int_to_ptr.hbm [resolvable:$true] %s331_s20 }
  0x1f   : > { %870 = dma.hbm_to_vmem [thread:$0]  (!%p1323_p5), %s332_s20, 256, %s334_s24, [#allocation9], %s1222_s26, %s1222_s26, %s1223_s27  }
  0x20   : > { %p59_p8 = scmp.ne.s32.totalorder %s1207_s11, %s1203_s10  ;;  %p60_p9 = scmp.eq.s32.totalorder %s1219_s14, 0 }
  0x21   : > { %p65_p10 = scmp.ne.s32.totalorder %s1203_s10, %s1199_s30  ;;  %s1577_s21 = smov (%p45_p7, %s43_s21), 0 }
  0x22   : > { %1553 = sst [smem:[#allocation19_spill]] %s1577_s21  ;;  %p1350_p11 = por %p60_p9, %p59_p8 }
  0x23   : > { %p1356_p12 = por %p66_p1, %p65_p10  ;;  %s47_s26 = ssub.s32 %s1215_s13, %s1577_s21 }
  0x24   : > { %p217_p13 = scmp.eq.s32.totalorder %s1307_s15, 1  ;;  %p50_p0 = scmp.eq.s32.totalorder %s47_s26, 0 }
  0x25   : > { %p223_p2 = scmp.eq.s32.totalorder %s1536_s18, 1  ;;  %p888_p5 = scmp.lt.s32.totalorder %s1219_s14, 2 }
  0x26   : > { %p1365_p4 = por %p217_p13, %p59_p8  ;;  %s350_s17 = sand.u32 1, %s1207_s11  }
  0x27   : > { %s1371_s29 = scalar_select %p50_p0, %s1207_s11, %s52_s28  }
  0x28   : > { %p1373_p7 = por %p223_p2, %p65_p10  ;;  %s790_s20 = sshll.u32 %s350_s17, 3 }
  0x29   : > { %s791_s23 = sshll.u32 %s1215_s13, 3  ;;  %s1558_s0 = sld [smem:[#allocation22_spill]] }
  0x2a   : > { %s354_s3 = scalar_lea.vmem [#allocation2], %s790_s20  ;;  %p872_p8 = pnand %p888_p5, %p1350_p11 }
  0x2b   : > { %s363_s18 = sshll.u32 %s354_s3, 4  ;;  %s351_s28 = scalar_lea.sflag [#allocation3], %s350_s17  ;;  %s364_s18 = int_to_ptr.vmem [resolvable:$true] %s363_s18 }
  0x2d   : > { %372 = sbr.rel (%p1315_p3) target bundleno = 233 (0xe9), region = 48 }
  0x2f   : > { %s359_s26 = scalar_lea.hbm %s1558_s0, %s791_s23 }
  0x30   : > { %s361_s5 = sshll.u32 %s359_s26, 4  ;;  %s362_s5 = int_to_ptr.hbm [resolvable:$true] %s361_s5 }
  0x31   : > { %874 = dma.hbm_to_vmem [thread:$0]  (!%p872_p8), %s362_s5, 128, %s364_s18, %s351_s28  }
  0x32   : > { %s1387_s21 = sand.u32 1, %s1203_s10  }
  0x33   : > { %s793_s1 = sshll.u32 %s1387_s21, 3  ;;  %s375_s23 = scalar_lea.sflag [#allocation3], %s1387_s21 }
  0x34   : > { %s378_s20 = scalar_lea.vmem [#allocation2], %s793_s1 }
  0x35   : > { %1178 = dma.done.wait (%p1356_p12), %s375_s23, 128  }
  0x36   : > { %1180 = vsyncadd (%p1356_p12), %s375_s23, 4294967168 }
  0x37   : > { %1182 = dma.done.wait (%p66_p1), [#allocation6], 512  }
  0x38   : > { %1184 = vsyncadd (%p66_p1), [#allocation6], 4294966784 }
  0x39   : > { %1186 = dma.done.wait (%p66_p1), [#allocation9], 256  }
  0x3a   : > { %1188 = vsyncadd (%p66_p1), [#allocation9], 4294967040  ;;  %v836_v0 = vld [vmem:[#allocation5 + $0x8] sm:$0xff]  ;;  %v838_v1 = vld [vmem:[#allocation7 + $0x8] sm:$0xff]  ;;  %vm462_vm0 = vcmask 261120   ;;  %s1404_s3 = sshll.u32 %s1387_s21, 2 }
  0x3b   : > { %v840_v2 = vld [vmem:[#allocation8 + $0x8] sm:$0xff]  ;;  %v835_v3 = vld [vmem:[#allocation5] sm:$0xff]  ;;  %472 = vmatpush.bf16.msra.mxu0 %v836_v0  ;;  %508 = vmatpush.bf16.msra.mxu1 %v838_v1  ;;  %v837_v4 = vld [vmem:[#allocation7] sm:$0xff]  ;;  %s830_s5 = sshll.u32 %s1211_s12, 2  ;;  %s557_s19 = sand.u32 1, %s1307_s15   ;;  %vm480_vm1 = vcmask 257024  }
  0x3c   : > { %v440_v5 = vld [vmem:[%s378_s20] sm:$0xff]  ;;  %543 = vmatpush.bf16.msra.mxu2 %v840_v2  ;;  %v839_v6 = vld [vmem:[#allocation8] sm:$0xff]  ;;  %s1559_s2 = sld [smem:[#allocation24_spill]]  ;;  %s589_s28 = scalar_lea.hbm %s1534_s8, %s830_s5 }
  0x3d   : > { %v441_v7 = vpack.c.bf16 %v440_v5, %v440_v5  ;;  %v947_v9 = vld [vmem:[%s1530_s4] ss:$0 sm:$0xff]  ;;  %s431_s1 = scalar_lea.vmem [#allocation11], %s1404_s3  ;;  %s574_s12 = scalar_lea.hbm %s1533_s7, %s830_s5 }
  0x3e   : > { %s1418_s23 = sshll.u32 %s431_s1, 4  ;;  %s1424_s15 = sshll.u32 %s589_s28, 4  ;;  %v948_v16 = vld [vmem:[%s1532_s6] ss:$0 sm:$0xff]  ;;  %s592_s23 = int_to_ptr.vmem [resolvable:$true] %s1418_s23  ;;  %s594_s15 = int_to_ptr.hbm [resolvable:$true] %s1424_s15 }
  0x3f   : > { %473 = vmatpush.bf16.msra.mxu0 %v835_v3  ;;  %509 = vmatpush.bf16.msra.mxu1 %v837_v4  ;;  %s1538_s18 = scalar_lea.vmem [#allocation10], %s1404_s3  ;;  %s1431_s22 = sshll.u32 %s574_s12, 4 }
  0x40   : > { %544 = vmatpush.bf16.msra.mxu2 %v839_v6  ;;  %s1429_s25 = sshll.u32 %s1538_s18, 4  ;;  %1561 = sst [smem:[#allocation21_spill]] %s1431_s22 }
  0x41   : > { %1560 = sst [smem:[#allocation20_spill]] %s1429_s25  ;;  %s604_s24 = scalar_lea.hbm %s1535_s9, %s830_s5 }
  0x42   : > { %808 = vmatmul.msk.bf16.vlgmr.msra.gmra.mxu0 %vm462_vm0, %v441_v7  ;;  %817 = vmatmul.msk.bf16.vlgmr.msra.gmra.mxu1 %vm462_vm0, %v441_v7  ;;  %v946_v8 = vld [vmem:[%s1559_s2] ss:$0 sm:$0xff]  ;;  %s1542_s20 = scalar_lea.vmem [#allocation13], %s1404_s3  ;;  %s1448_s18 = sshll.u32 %s604_s24, 4  ;;  %s609_s18 = int_to_ptr.hbm [resolvable:$true] %s1448_s18 }
  0x43   : > { %826 = vmatmul.msk.bf16.vlgmr.msra.gmra.mxu2 %vm462_vm0, %v441_v7  ;;  %s1446_s12 = sshll.u32 %s1542_s20, 4  ;;  %s1450_s0 = scalar_lea.sflag [#allocation12], %s557_s19  ;;  %s607_s12 = int_to_ptr.vmem [resolvable:$true] %s1446_s12 }
  0x44   : > { %s1083_s5 = sshra.s32 %s594_s15, 4  ;;  %s1089_s25 = scalar_lea.hbm %s1534_s8, 8  ;;  %s1084_s5 = int_to_ptr.hbm [resolvable:$true] %s1083_s5 }
  0x45   : > { %s1085_s17 = scalar_lea.hbm %s1084_s5, 4  ;;  %p1090_p10 = scmp.lt.s32.totalorder %s1084_s5, %s1534_s8 }
  0x46   : > { %p1086_p1 = scmp.ne.s32.totalorder %s1084_s5, %s1085_s17  ;;  %p1091_p11 = scmp.lt.s32.totalorder %s1089_s25, %s1085_s17 }
  0x48   : > { %p1087_p3 = pnand %p1086_p1, %p1365_p4  ;;  %p1092_p12 = por %p1091_p11, %p1090_p10 }
  0x4a   : > { %p1088_p9 = pneg %p1087_p3 }
  0x4c   : > { %p1093_p13 = pnand %p1092_p12, %p1088_p9 }
  0xbf   : > { %v475_v10 = vpop.f32.mrf.mxu0  ;;  %v511_v11 = vpop.f32.mrf.mxu1 }
  0xc0   : > { %v476_v12 = vadd.f32 %v946_v8, %v475_v10  ;;  %v512_v13 = vadd.f32 %v947_v9, %v511_v11 }
  0xc2   : > { %v479_v14 = vpack.c.bf16 %v476_v12, %v476_v12  ;;  %v515_v15 = vpack.c.bf16 %v512_v13, %v512_v13 }
  0xc4   : > { %516 = vst.msk [vmem:[%s431_s1] sm:$0xf] %vm480_vm1, %v515_v15 }
  0xc5   : > { %1096 = shalt.err (!%p1093_p13)
}
  0xc6   : > { %s1562_s19 = sld [smem:[#allocation21_spill]]  ;;  %s1563_s24 = scalar_lea.vmem [#allocation10], %s1404_s3  ;;  %v546_v17 = vpop.f32.mrf.mxu2 }
  0xc7   : > { %856 = dma.vmem_to_hbm [thread:$0]  (%p1365_p4), %s592_s23, 64, %s594_s15, %s1450_s0   ;;  %481 = vst.msk [vmem:[%s1563_s24] sm:$0xf] %vm480_vm1, %v479_v14 }
  0xc8   : > { %s553_s22 = scalar_lea.sflag [#allocation4], %s1387_s21  ;;  %s1117_s1 = scalar_lea.hbm %s1533_s7, 8 }
  0xcc   : > { %s1564_s5 = int_to_ptr.hbm [resolvable:$true] %s1562_s19 }
  0xcd   : > { %s1111_s25 = sshra.s32 %s1564_s5, 4  ;;  %s1112_s25 = int_to_ptr.hbm [resolvable:$true] %s1111_s25 }
  0xce   : > { %s1113_s17 = scalar_lea.hbm %s1112_s25, 4  ;;  %p1118_p8 = scmp.lt.s32.totalorder %s1112_s25, %s1533_s7 }
  0xcf   : > { %p1114_p0 = scmp.ne.s32.totalorder %s1112_s25, %s1113_s17  ;;  %p1119_p1 = scmp.lt.s32.totalorder %s1117_s1, %s1113_s17 }
  0xd1   : > { %p1115_p2 = pnand %p1114_p0, %p1365_p4  ;;  %p1120_p3 = por %p1119_p1, %p1118_p8 }
  0xd3   : > { %p1116_p5 = pneg %p1115_p2 }
  0xd5   : > { %p1121_p9 = pnand %p1120_p3, %p1116_p5 }
  0xd7   : > { %1124 = shalt.err (!%p1121_p9)
}
  0xd8   : > { %s1565_s21 = smov %s1564_s5  ;;  %s1566_s23 = sld [smem:[#allocation20_spill]]  ;;  %v547_v18 = vadd.f32 %v948_v16, %v546_v17  ;;  %v477_v19 = vpop.f32.mrf.mxu0  ;;  %v513_v20 = vpop.f32.mrf.mxu1 }
  0xd9   : > { %s1568_s2 = scalar_lea.vmem [#allocation13], %s1404_s3  ;;  %s1139_s20 = sshra.s32 %s609_s18, 4  ;;  %s1140_s20 = int_to_ptr.hbm [resolvable:$true] %s1139_s20 }
  0xda   : > { %v550_v21 = vpack.c.bf16 %v547_v18, %v547_v18  ;;  %s1141_s24 = scalar_lea.hbm %s1140_s20, 4  ;;  %p1146_p13 = scmp.lt.s32.totalorder %s1140_s20, %s1535_s9 }
  0xdb   : > { %p1142_p10 = scmp.ne.s32.totalorder %s1140_s20, %s1141_s24 }
  0xdc   : > { %551 = vst.msk [vmem:[%s1568_s2] sm:$0xf] %vm480_vm1, %v550_v21 }
  0xdd   : > { %p1143_p11 = pnand %p1142_p10, %p1365_p4 }
  0xde   : > { %s1567_s15 = int_to_ptr.vmem [resolvable:$true] %s1566_s23 }
  0xdf   : > { %855 = dma.vmem_to_hbm [thread:$0]  (%p1365_p4), %s1567_s15, 64, %s1565_s21, %s553_s22  }
  0xe0   : > { %p1144_p12 = pneg %p1143_p11  ;;  %s1145_s22 = scalar_lea.hbm %s1535_s9, 8 }
  0xe1   : > { %p1147_p0 = scmp.lt.s32.totalorder %s1145_s22, %s1141_s24 }
  0xe3   : > { %p1148_p2 = por %p1147_p0, %p1146_p13 }
  0xe5   : > { %p1149_p5 = pnand %p1148_p2, %p1144_p12 }
  0xe7   : > { %1152 = shalt.err (!%p1149_p5)
}
  0xe8   : > { %857 = dma.vmem_to_hbm [thread:$0]  (%p1365_p4), %s607_s12, 64, %s609_s18, %s1450_s0   ;;  %v548_v22 = vpop.f32.mrf.mxu2 }
  0xe9 PF: > { %s620_s3 = sand.u32 1, %s1199_s30   ;;  %p876_p8 = pnand %p789_p6, %p1373_p7 }
  0xea   : > { %s621_s26 = scalar_lea.sflag [#allocation4], %s620_s3 }
  0xeb   : > { %p877_p1 = pneg %p876_p8 }
  0xed   : > { %1190 = dma.done.wait (%p877_p1), %s621_s26, 64  }
  0xee   : > { %1192 = vsyncadd (%p877_p1), %s621_s26, 4294967232  ;;  %s1569_s28 = sadd.s32 4294967294, %s1219_s14  }
  0xef   : > { %s630_s1 = sand.u32 1, %s1569_s28  }
  0xf0   : > { %s631_s21 = scalar_lea.sflag [#allocation12], %s630_s1 }
  0xf1   : > { %1194 = dma.done.wait (%p877_p1), %s631_s21, 128  }
  0xf2   : > { %1196 = vsyncadd (%p877_p1), %s631_s21, 4294967168  ;;  %s31_s14 = sadd.s32 1, %s1219_s14   ;;  %s1570_s27 = sld [smem:[#allocation19_spill]] }
  0xf3   : > { %p28_p4 = scmp.ge.s32.totalorder %s31_s14, 4   ;;  %s1571_s30 = smov %s1203_s10 }
  0xf4   : > { %s1572_s10 = smov %s1207_s11  ;;  %s1573_s11 = smov %s1371_s29 }
  0xf5   : > { %s1574_s12 = smov %s1215_s13  ;;  %30 = sbr.rel (!%p28_p4) target bundleno = 16 (0x10), region = 137 }
  0xf8   : > { %s1575_s13 = smov %s1570_s27 }
  0xfa   :  { %647 = vsyncpa [#allocation3], 1 }
  0xfb   :  { %649 = vsyncpa [#allocation3 + $0x1], 1 }
  0xfc   :  { %650 = vsyncpa [#allocation6], 1 }
  0xfd   :  { %651 = vsyncpa [#allocation9], 1 }
  0xfe   :  { %652 = vsyncpa [#allocation4], 1 }
  0xff   :  { %654 = vsyncpa [#allocation4 + $0x1], 1 }
 0x100   :  { %655 = vsyncpa [#allocation12], 1 }
 0x101   :  { %657 = vsyncpa [#allocation12 + $0x1], 1 }

</bundles_post_ra>
